<compile_context>
chip_gen: v6e
topology: v6e:2x2x1
jax: 0.10.0
libtpu: 0.0.40
codegen_flags: <defaults>
</compile_context>

<pallas_src>
import math
import numpy as np

import jax
import jax.numpy as jnp
from jax.experimental import pallas as pl
from jax.experimental.pallas import tpu as pltpu


# ----------------------------------------------------------------------------
# Helpers
# ----------------------------------------------------------------------------
def _round_up(x, m):
    return ((x + m - 1) // m) * m


# Tile targets (multiples of (8, 128)); conservative enough for v5e's 16 MiB
# scoped-VMEM default and v7x's 64 MiB physical VMEM even with double buffering:
#   2*(tm*tk + tk*tn)*4B + 2*tm*tn*4B  <=  ~2.5 MiB at (256, 512, 256) in f32.
_TM, _TN, _TK = 256, 256, 512


# ----------------------------------------------------------------------------
# Pallas kernel: tiled matmul with f32 VMEM accumulator (the whole forward pass)
# ----------------------------------------------------------------------------
def _matmul_kernel(x_ref, w_ref, o_ref, acc_ref):
    @pl.when(pl.program_id(2) == 0)
    def _init():
        acc_ref[...] = jnp.zeros_like(acc_ref)

    acc_ref[...] += jnp.dot(x_ref[...], w_ref[...],
                            preferred_element_type=jnp.float32)

    @pl.when(pl.program_id(2) == pl.num_programs(2) - 1)
    def _store():
        o_ref[...] = acc_ref[...].astype(o_ref.dtype)


def _pallas_matmul(x_pad, w_pad, tm, tn, tk):
    """x_pad: (mp, kp), w_pad: (kp, np_) — all dims already multiples of the tiles."""
    mp, kp = x_pad.shape
    kp2, np_ = w_pad.shape
    assert kp == kp2, (x_pad.shape, w_pad.shape)
    grid = (mp // tm, np_ // tn, kp // tk)
    return pl.pallas_call(
        _matmul_kernel,
        out_shape=jax.ShapeDtypeStruct((mp, np_), jnp.float32),
        grid_spec=pltpu.PrefetchScalarGridSpec(
            num_scalar_prefetch=0,
            grid=grid,
            in_specs=[pl.BlockSpec((tm, tk), lambda i, j, k: (i, k)),
                      pl.BlockSpec((tk, tn), lambda i, j, k: (k, j))],
            out_specs=pl.BlockSpec((tm, tn), lambda i, j, k: (i, j)),
            scratch_shapes=[pltpu.VMEM((tm, tn), jnp.float32)]),
        compiler_params=pltpu.CompilerParams(
            dimension_semantics=("parallel", "parallel", "arbitrary"),
            vmem_limit_bytes=32 * 1024 * 1024),
    )(x_pad, w_pad)


# ----------------------------------------------------------------------------
# Parameter init (matches reset_parameters(): U(-stdv, stdv), stdv = 1/sqrt(out))
# ----------------------------------------------------------------------------
def init_bttucker_fc(key, input_shape, output_shape, rank_shape, block_num):
    assert len(input_shape) == len(output_shape) == len(rank_shape)
    output_size = int(np.prod(output_shape))
    stdv = 1.0 / math.sqrt(output_size)
    weights = []
    for _ in range(block_num):
        key, k_core = jax.random.split(key)
        core = jax.random.uniform(
            k_core, tuple(int(r) for r in rank_shape),
            minval=-stdv, maxval=stdv, dtype=jnp.float32)
        factors = []
        for j in range(len(rank_shape)):
            key, k_f = jax.random.split(key)
            shape = (int(input_shape[j]), int(output_shape[j]), int(rank_shape[j]))
            factors.append(jax.random.uniform(
                k_f, shape, minval=-stdv, maxval=stdv, dtype=jnp.float32))
        weights.append(dict(core=core, factors=factors))
    return weights


# ----------------------------------------------------------------------------
# Pure-JAX reference: exact line-for-line port of BTTuncker_FC.dec_multy.
# Used (a) as the numerical reference and (b) once at prepare time to build W_eff.
# ----------------------------------------------------------------------------
def dec_multy_reference(inputs, weights, input_shape, rank_shape):
    batch_size = int(inputs.shape[0])
    input_num = len(input_shape)
    core_size = int(np.prod(rank_shape))

    x = inputs.reshape((-1,) + tuple(int(s) for s in input_shape))
    perm = [0] + [input_num - i for i in range(input_num)]   # reverse factor axes
    x = jnp.transpose(x, perm)

    res = None
    for w in weights:
        core = w['core']
        factors = w['factors']
        factor_offset = 1
        cal = x
        for factor in factors:
            I, J, R = (int(d) for d in factor.shape)
            cal = jnp.matmul(cal.reshape(-1, I), factor.reshape(I, J * R))
            cal = cal.reshape(batch_size * factor_offset, -1, J * R)
            cal = jnp.transpose(cal, (0, 2, 1))
            factor_offset *= J
        cal = jnp.matmul(cal.reshape(-1, core_size), core.reshape(core_size, -1))
        cal = cal.reshape(batch_size, -1)
        res = cal if res is None else res + cal
    return res


# ----------------------------------------------------------------------------
# One-time weight preparation: fold ALL block-term Tucker contractions + the
# block sum into a single effective matrix W_eff, padded/laid out for the MXU.
# ----------------------------------------------------------------------------
def prepare_bttucker_fc(weights, input_shape, output_shape, rank_shape,
                        compute_dtype=jnp.float32):
    input_size = int(np.prod(input_shape))
    output_size = int(np.prod(output_shape))
    # dec_multy is linear with no bias, so its matrix is dec_multy(I).
    w_eff = dec_multy_reference(jnp.eye(input_size, dtype=jnp.float32),
                                weights, input_shape, rank_shape)  # (in, out)
    tk = min(_TK, _round_up(input_size, 128))
    tn = min(_TN, _round_up(output_size, 128))
    kp = _round_up(input_size, tk)
    np_ = _round_up(output_size, tn)
    w_pad = (jnp.zeros((kp, np_), compute_dtype)
             .at[:input_size, :output_size].set(w_eff.astype(compute_dtype)))
    return dict(w=w_pad, input_size=input_size, output_size=output_size,
                tk=tk, tn=tn, compute_dtype=compute_dtype)


# ----------------------------------------------------------------------------
# Forward pass: one padded copy of the activations + ONE pallas_call.
# ----------------------------------------------------------------------------
def bttucker_fc_apply(x, prep):
    m = int(x.shape[0])
    K = prep['input_size']
    N = prep['output_size']
    w = prep['w']
    kp, np_ = w.shape
    tk, tn = prep['tk'], prep['tn']
    tm = min(_TM, _round_up(m, 8))
    mp = _round_up(m, tm)
    x_pad = (jnp.zeros((mp, kp), prep['compute_dtype'])
             .at[:m, :K].set(x.astype(prep['compute_dtype'])))
    out = _pallas_matmul(x_pad, w, tm, tn, tk)
    return out[:m, :N]


def bttucker_fc_forward(x, weights, input_shape, output_shape, rank_shape,
                        compute_dtype=jnp.float32):
    """Convenience wrapper: prepare (weight fold) + apply.  In training, re-run
    prepare_bttucker_fc whenever the decomposed parameters change."""
    prep = prepare_bttucker_fc(weights, input_shape, output_shape, rank_shape,
                               compute_dtype)
    return bttucker_fc_apply(x, prep)


# ----------------------------------------------------------------------------
# Demo / self-check
# ----------------------------------------------------------------------------
if __name__ == "__main__":
    # Shapes consistent with the module's constraints:
    #   input_size = prod(input_shape), output_size = prod(output_shape),
    #   len(input_shape) == len(output_shape) == len(rank_shape)
    input_shape = (2, 4, 4)      # input_size  = 32
    output_shape = (2, 4, 4)     # output_size = 32
    rank_shape = (2, 2, 2)
    block_num = 2
    batch = 2

    input_size = int(np.prod(input_shape))
    output_size = int(np.prod(output_shape))

    key = jax.random.PRNGKey(0)
    key, k_x, k_w = jax.random.split(key, 3)
    x = jax.random.normal(k_x, (batch, input_size), dtype=jnp.float32)
    weights = init_bttucker_fc(k_w, input_shape, output_shape, rank_shape, block_num)

    # Pure-JAX reference (exact dec_multy port).
    ref = jax.block_until_ready(
        dec_multy_reference(x, weights, input_shape, rank_shape))

    # f32 Pallas path (weight fold hoisted out of the hot loop).
    prep = prepare_bttucker_fc(weights, input_shape, output_shape, rank_shape)
    out = jax.block_until_ready(bttucker_fc_apply(x, prep))
    assert out.shape == (batch, output_size), out.shape
    np.testing.assert_allclose(np.asarray(out), np.asarray(ref),
                               rtol=1e-4, atol=1e-5)

    # bf16-operand path (v6e/v7x MXU fast path; accumulation stays f32).
    prep_bf16 = prepare_bttucker_fc(weights, input_shape, output_shape, rank_shape,
                                    compute_dtype=jnp.bfloat16)
    out_bf16 = jax.block_until_ready(bttucker_fc_apply(x, prep_bf16))
    np.testing.assert_allclose(np.asarray(out_bf16), np.asarray(ref),
                               rtol=1e-1, atol=1e-2)

    print("KERNEL_OK")
</pallas_src>

<mosaic_0001>
module attributes {stable_mosaic.version = 11 : i64} {
  func.func @_matmul_kernel(%arg0: i32, %arg1: i32, %arg2: i32, %arg3: memref<8x128xf32, #tpu.memory_space<vmem>>, %arg4: memref<128x128xf32, #tpu.memory_space<vmem>>, %arg5: memref<8x128xf32, #tpu.memory_space<vmem>>, %arg6: memref<8x128xf32, #tpu.memory_space<vmem>>) attributes {dimension_semantics = [#tpu.dimension_semantics<parallel>, #tpu.dimension_semantics<parallel>, #tpu.dimension_semantics<arbitrary>], iteration_bounds = array<i64: 1, 1, 1>, scalar_prefetch = 0 : i64, scratch_operands = 1 : i64, tpu.core_type = #tpu.core_type<tc>, window_params = [{transform_indices = @transform_0, window_bounds = array<i64: 8, 128>}, {transform_indices = @transform_1, window_bounds = array<i64: 128, 128>}, {transform_indices = @transform_2, window_bounds = array<i64: 8, 128>}]} {
    %c0_i32 = arith.constant 0 : i32
    %0 = arith.cmpi eq, %arg2, %c0_i32 : i32
    %1 = arith.extui %0 : i1 to i32
    %c0_i32_0 = arith.constant 0 : i32
    %2 = arith.cmpi ne, %1, %c0_i32_0 : i32
    scf.if %2 {
      %cst_10 = arith.constant 0.000000e+00 : f32
      %12 = vector.broadcast %cst_10 : f32 to vector<8x128xf32>
      %c0_11 = arith.constant 0 : index
      %c0_12 = arith.constant 0 : index
      %13 = vector.load %arg6[%c0_11, %c0_12] : memref<8x128xf32, #tpu.memory_space<vmem>>, vector<8x128xf32>
      tpu.vector_store %arg6[%c0_11, %c0_12], %12 {strides = array<i32>} : memref<8x128xf32, #tpu.memory_space<vmem>>, vector<8x128xf32>,
    } else {
    }
    %c0 = arith.constant 0 : index
    %c0_1 = arith.constant 0 : index
    %3 = vector.load %arg6[%c0, %c0_1] : memref<8x128xf32, #tpu.memory_space<vmem>>, vector<8x128xf32>
    %c0_2 = arith.constant 0 : index
    %c0_3 = arith.constant 0 : index
    %4 = vector.load %arg3[%c0_2, %c0_3] : memref<8x128xf32, #tpu.memory_space<vmem>>, vector<8x128xf32>
    %c0_4 = arith.constant 0 : index
    %c0_5 = arith.constant 0 : index
    %5 = vector.load %arg4[%c0_4, %c0_5] : memref<128x128xf32, #tpu.memory_space<vmem>>, vector<128x128xf32>
    %cst = arith.constant dense<0.000000e+00> : vector<8x128xf32>
    %6 = tpu.matmul %4, %5, %cst {dimension_numbers = #tpu.dot_dimension_numbers<[1], [0], [0], [1], [0, 0, 1, 1], [], []>} : vector<8x128xf32>, vector<128x128xf32>, vector<8x128xf32> -> vector<8x128xf32>
    %7 = arith.addf %3, %6 : vector<8x128xf32>
    %c0_6 = arith.constant 0 : index
    %c0_7 = arith.constant 0 : index
    %8 = vector.load %arg6[%c0_6, %c0_7] : memref<8x128xf32, #tpu.memory_space<vmem>>, vector<8x128xf32>
    tpu.vector_store %arg6[%c0_6, %c0_7], %7 {strides = array<i32>} : memref<8x128xf32, #tpu.memory_space<vmem>>, vector<8x128xf32>,
    %c0_i32_8 = arith.constant 0 : i32
    %9 = arith.cmpi eq, %arg2, %c0_i32_8 : i32
    %10 = arith.extui %9 : i1 to i32
    %c0_i32_9 = arith.constant 0 : i32
    %11 = arith.cmpi ne, %10, %c0_i32_9 : i32
    scf.if %11 {
      %c0_10 = arith.constant 0 : index
      %c0_11 = arith.constant 0 : index
      %12 = vector.load %arg6[%c0_10, %c0_11] : memref<8x128xf32, #tpu.memory_space<vmem>>, vector<8x128xf32>
      %c0_12 = arith.constant 0 : index
      %c0_13 = arith.constant 0 : index
      %13 = vector.load %arg5[%c0_12, %c0_13] : memref<8x128xf32, #tpu.memory_space<vmem>>, vector<8x128xf32>
      tpu.vector_store %arg5[%c0_12, %c0_13], %12 {strides = array<i32>} : memref<8x128xf32, #tpu.memory_space<vmem>>, vector<8x128xf32>,
    } else {
    }
    return
  }
  func.func @transform_0(%arg0: i32, %arg1: i32, %arg2: i32) -> (i32, i32) {
    %c0_i32 = arith.constant 0 : i32
    return %arg0, %arg2 : i32, i32
  }
  func.func @transform_1(%arg0: i32, %arg1: i32, %arg2: i32) -> (i32, i32) {
    %c0_i32 = arith.constant 0 : i32
    return %arg2, %arg1 : i32, i32
  }
  func.func @transform_2(%arg0: i32, %arg1: i32, %arg2: i32) -> (i32, i32) {
    %c0_i32 = arith.constant 0 : i32
    return %arg0, %arg1 : i32, i32
  }
}

</mosaic_0001>

<bundles_post_ra>
// kernel: tpu_custom_call.1
= control target key start
LH: loop header
LB: loop body
LE: loop exit
PB: predicated region body
PF: predicated region fallthrough
CT: control target
= control target key end

     0   :  { %7 = vsyncpa [#allocation4], 0  ;;  %s310_s0 = inlined_call_operand.hbm [shape: f32[8,128], index: 0, kind: input, shape index: {}]   ;;  %s311_s1 = inlined_call_operand.hbm [shape: f32[128,128], index: 1, kind: input, shape index: {}]   ;;  %s312_s2 = inlined_call_operand.hbm [shape: f32[8,128], index: 2, kind: output, shape index: {}]  }
   0x1   :  { %8 = vsyncpa [#allocation7], 0 }
   0x2   :  { %9 = vsyncpa [#allocation5], 0  ;;  %s279_s9 = smov [#allocation3]   ;;  %s280_s11 = smov [#allocation6]  }
   0x3   :  { %s16_s10 = sshll.u32 %s279_s9, 4  ;;  %s25_s12 = sshll.u32 %s280_s11, 4  ;;  %s17_s10 = int_to_ptr.vmem [resolvable:$true] %s16_s10  ;;  %s26_s12 = int_to_ptr.vmem [resolvable:$true] %s25_s12 }
   0x4   :  { %s221_s13 = scalar_lea.vmem %s17_s10, 128  ;;  %p226_p1 = scmp.lt.s32.totalorder %s17_s10, %s17_s10 }
   0x5   :  { %p222_p0 = scmp.ne.s32.totalorder %s17_s10, %s221_s13  ;;  %p227_p2 = scmp.lt.s32.totalorder %s221_s13, %s221_s13 }
   0x7   :  { %p228_p3 = por %p227_p2, %p226_p1 }
   0x9   :  { %p229_p4 = pnand %p228_p3, %p222_p0 }
   0xb   :  { %232 = shalt.err (!%p229_p4)
}
   0xc   :  { %19 = dma.hbm_to_vmem [thread:$0]  %s310_s0, 128, %s17_s10, [#allocation4]  }
   0xd   :  { %s241_s16 = scalar_lea.vmem %s26_s12, 2048  ;;  %p246_p6 = scmp.lt.s32.totalorder %s26_s12, %s26_s12 }
   0xe   :  { %p242_p5 = scmp.ne.s32.totalorder %s26_s12, %s241_s16  ;;  %p247_p7 = scmp.lt.s32.totalorder %s241_s16, %s241_s16 }
  0x10   :  { %p248_p8 = por %p247_p7, %p246_p6 }
  0x12   :  { %p249_p9 = pnand %p248_p8, %p242_p5 }
  0x14   :  { %252 = shalt.err (!%p249_p9)
}
  0x15   :  { %s281_s17 = smov 128   ;;  %s282_s18 = smov 8  }
  0x16   :  { %31 = dma.hbm_to_vmem [thread:$0]  %s311_s1, 2048, %s26_s12, [#allocation7], %s281_s17, %s281_s17, %s282_s18  }
  0x17   :  { %273 = dma.done.wait [#allocation4], 128  }
  0x18   :  { %274 = vsyncadd [#allocation4], 4294967168 }
  0x19   :  { %275 = dma.done.wait [#allocation7], 2048  }
  0x1a   :  { %276 = vsyncadd [#allocation7], 4294965248  ;;  %v283_v0 = vmov 0.0   ;;  %vm284_vm0 = vmmov 0   ;;  %v60_v1 = vld [vmem:[#allocation6 + $0x78] sm:$0xff]  ;;  %v59_v2 = vld [vmem:[#allocation6 + $0x70] sm:$0xff] }
  0x1b   :  { %171 = vmatprep.subr.mxu0 %v283_v0  ;;  %203 = vmatprep.mubr.msk.f32.mxu0 %vm284_vm0, %v283_v0  ;;  %v58_v3 = vld [vmem:[#allocation6 + $0x68] sm:$0xff]  ;;  %v57_v4 = vld [vmem:[#allocation6 + $0x60] sm:$0xff]  ;;  %v56_v5 = vld [vmem:[#allocation6 + $0x58] sm:$0xff]  ;;  %s285_s0 = smov [#allocation8]  }
  0x1c   :  { %172 = vmatpush3.msra.mxu0 %v60_v1  ;;  %v55_v6 = vld [vmem:[#allocation6 + $0x50] sm:$0xff]  ;;  %v54_v7 = vld [vmem:[#allocation6 + $0x48] sm:$0xff]  ;;  %v53_v8 = vld [vmem:[#allocation6 + $0x40] sm:$0xff]  ;;  %s144_s1 = sshll.u32 %s285_s0, 4  ;;  %s145_s1 = int_to_ptr.vmem [resolvable:$true] %s144_s1 }
  0x1d   :  { %173 = vmatprep.subr.mxu0 %v283_v0  ;;  %v52_v9 = vld [vmem:[#allocation6 + $0x38] sm:$0xff]  ;;  %v51_v10 = vld [vmem:[#allocation6 + $0x30] sm:$0xff]  ;;  %v50_v11 = vld [vmem:[#allocation6 + $0x28] sm:$0xff]  ;;  %s253_s21 = scalar_lea.vmem %s145_s1, 128  ;;  %p258_p11 = scmp.lt.s32.totalorder %s145_s1, %s145_s1 }
  0x1e   :  { %174 = vmatpush3.msra.mxu0 %v59_v2  ;;  %v49_v12 = vld [vmem:[#allocation6 + $0x20] sm:$0xff]  ;;  %v48_v13 = vld [vmem:[#allocation6 + $0x18] sm:$0xff]  ;;  %v47_v14 = vld [vmem:[#allocation6 + $0x10] sm:$0xff]  ;;  %p254_p10 = scmp.ne.s32.totalorder %s145_s1, %s253_s21  ;;  %p259_p12 = scmp.lt.s32.totalorder %s253_s21, %s253_s21 }
  0x1f   :  { %175 = vmatprep.subr.mxu0 %v283_v0  ;;  %v46_v15 = vld [vmem:[#allocation6 + $0x8] sm:$0xff]  ;;  %v45_v16 = vld [vmem:[#allocation6] sm:$0xff]  ;;  %v44_v17 = vld [vmem:[#allocation3] sm:$0xff] }
  0x20   :  { %176 = vmatpush3.msra.mxu0 %v58_v3  ;;  %p260_p13 = por %p259_p12, %p258_p11 }
  0x21   :  { %177 = vmatprep.subr.mxu0 %v283_v0 }
  0x22   :  { %178 = vmatpush3.msra.mxu0 %v57_v4  ;;  %p261_p0 = pnand %p260_p13, %p254_p10 }
  0x23   :  { %179 = vmatprep.subr.mxu0 %v283_v0 }
  0x24   :  { %180 = vmatpush3.msra.mxu0 %v56_v5 }
  0x25   :  { %181 = vmatprep.subr.mxu0 %v283_v0 }
  0x26   :  { %182 = vmatpush3.msra.mxu0 %v55_v6 }
  0x27   :  { %183 = vmatprep.subr.mxu0 %v283_v0 }
  0x28   :  { %184 = vmatpush3.msra.mxu0 %v54_v7 }
  0x29   :  { %185 = vmatprep.subr.mxu0 %v283_v0 }
  0x2a   :  { %186 = vmatpush3.msra.mxu0 %v53_v8 }
  0x2b   :  { %187 = vmatprep.subr.mxu0 %v283_v0 }
  0x2c   :  { %188 = vmatpush3.msra.mxu0 %v52_v9 }
  0x2d   :  { %189 = vmatprep.subr.mxu0 %v283_v0 }
  0x2e   :  { %190 = vmatpush3.msra.mxu0 %v51_v10 }
  0x2f   :  { %191 = vmatprep.subr.mxu0 %v283_v0 }
  0x30   :  { %192 = vmatpush3.msra.mxu0 %v50_v11 }
  0x31   :  { %193 = vmatprep.subr.mxu0 %v283_v0 }
  0x32   :  { %194 = vmatpush3.msra.mxu0 %v49_v12 }
  0x33   :  { %195 = vmatprep.subr.mxu0 %v283_v0 }
  0x34   :  { %196 = vmatpush3.msra.mxu0 %v48_v13 }
  0x35   :  { %197 = vmatprep.subr.mxu0 %v283_v0 }
  0x36   :  { %198 = vmatpush3.msra.mxu0 %v47_v14 }
  0x37   :  { %199 = vmatprep.subr.mxu0 %v283_v0 }
  0x38   :  { %200 = vmatpush3.msra.mxu0 %v46_v15 }
  0x39   :  { %201 = vmatprep.subr.mxu0 %v283_v0 }
  0x3a   :  { %202 = vmatpush3.msra.mxu0 %v45_v16 }
  0x3b   :  { %204 = vmatmul.mubr.f32.vlgmr.msra.gmra.mxu0 %v44_v17 }
  0xfb   :  { %v127_v18 = vpop.f32.mrf.mxu0 }
  0xfc   :  { %137 = vst [vmem:[#allocation8] sm:$0xff] %v127_v18 }
  0xfd   :  { %v205_v19 = vpop.f32.mrf.mxu0 }
  0xfe   :  { %264 = shalt.err (!%p261_p0)
}
  0xff   :  { %147 = dma.vmem_to_hbm [thread:$0]  %s145_s1, 128, %s312_s2, [#allocation5]  }
 0x100   :  { %277 = dma.done.wait [#allocation5], 128  }
 0x101   :  { %278 = vsyncadd [#allocation5], 4294967168 }
 0x102   :  { %151 = vsyncpa [#allocation4], 1 }
 0x103   :  { %152 = vsyncpa [#allocation7], 1 }
 0x104   :  { %153 = vsyncpa [#allocation5], 1 }

</bundles_post_ra>
